<compile_context>
chip_gen: v7x
topology: tpu7x:2x2x1
jax: 0.10.0
libtpu: 0.0.40
codegen_flags: <defaults>
</compile_context>

<pallas_src>
import jax
import jax.numpy as jnp
from jax.experimental import pallas as pl
from jax.experimental.pallas import tpu as pltpu

_SUBLANE = 8  # sublane granularity: second-to-last dim of a block


def _round_up(n, m):
    return ((n + m - 1) // m) * m


def dqn_mlp_kernel(x_ref, w1_ref, b1_ref, w2_ref, b2_ref, w3_ref, b3_ref, o_ref):
    # Dropout layers are identity in eval mode.
    # TODO(synk): training-mode dropout (stochastic masking) not implemented.
    x = x_ref[...]                                            # [tb, in_dim] f32
    h1 = jnp.dot(x, w1_ref[...], preferred_element_type=jnp.float32)
    h1 = jnp.maximum(h1 + b1_ref[...], 0.0)                   # [tb, hidden]
    h2 = jnp.dot(h1, w2_ref[...], preferred_element_type=jnp.float32)
    h2 = jnp.maximum(h2 + b2_ref[...], 0.0)                   # [tb, hidden]
    out = jnp.dot(h2, w3_ref[...], preferred_element_type=jnp.float32)
    o_ref[...] = out + b3_ref[...]                            # [tb, out_nodes]


def dqn_forward(x, params, *, batch_tile=8192, core_parallel=False):
    """Forward pass.

    x: [B, input_nodes] float32.
    params: dict of unpadded f32 weights ([in, out]) and biases ([1, out]).
    core_parallel: set True on v7x to shard the batch grid across the two
      TensorCores (CORE_PARALLEL); leave False on single-TC v5e/v6e.
    """
    w1, b1, w2, b2, w3, b3 = (params[k] for k in ("w1", "b1", "w2", "b2", "w3", "b3"))
    B, in_dim = x.shape
    out_dim = w3.shape[1]

    # Split the batch into even tiles (8-row aligned) so padding waste stays
    # below 8 rows per grid step even for awkward B.
    num_tiles = pl.cdiv(B, batch_tile)
    tb = _round_up(pl.cdiv(B, num_tiles), _SUBLANE)
    b_pad = num_tiles * tb
    if b_pad != B:
        x = jnp.pad(x, ((0, b_pad - B), (0, 0)))  # pad batch rows only

    # Weights / biases stay VMEM-resident (block index constant across steps).
    resident = lambda a: pl.BlockSpec(a.shape, lambda i: (0,) * a.ndim)

    semantics = (pltpu.CORE_PARALLEL if core_parallel else "parallel",)

    out = pl.pallas_call(
        dqn_mlp_kernel,
        out_shape=jax.ShapeDtypeStruct((b_pad, out_dim), jnp.float32),
        grid=(num_tiles,),
        in_specs=[
            pl.BlockSpec((tb, in_dim), lambda i: (i, 0)),  # x tiles over batch
            resident(w1), resident(b1),
            resident(w2), resident(b2),
            resident(w3), resident(b3),
        ],
        out_specs=pl.BlockSpec((tb, out_dim), lambda i: (i, 0)),
        compiler_params=pltpu.CompilerParams(dimension_semantics=semantics),
    )(x, w1, b1, w2, b2, w3, b3)

    return out if b_pad == B else out[:B]


def init_params(key, input_nodes, hidden_nodes, output_nodes):
    """nn.Linear-style uniform init; weights stored [in, out] (Linear.weight.T)."""

    def linear_init(k, fan_in, fan_out):
        kw, kb = jax.random.split(k)
        bound = 1.0 / jnp.sqrt(fan_in)
        w = jax.random.uniform(kw, (fan_in, fan_out), jnp.float32, -bound, bound)
        b = jax.random.uniform(kb, (1, fan_out), jnp.float32, -bound, bound)
        return w, b

    k1, k2, k3 = jax.random.split(key, 3)
    w1, b1 = linear_init(k1, input_nodes, hidden_nodes)
    w2, b2 = linear_init(k2, hidden_nodes, hidden_nodes)
    w3, b3 = linear_init(k3, hidden_nodes, output_nodes)
    return {"w1": w1, "b1": b1, "w2": w2, "b2": b2, "w3": w3, "b3": b3}


def dqn_reference(x, p):
    """Pure-JAX f32 reference (dropout = identity at inference)."""
    h1 = jnp.maximum(jnp.dot(x, p["w1"]) + p["b1"], 0.0)
    h2 = jnp.maximum(jnp.dot(h1, p["w2"]) + p["b2"], 0.0)
    return jnp.dot(h2, p["w3"]) + p["b3"]


if __name__ == "__main__":
    # simple_spread-like sizes: obs dim 18, hidden 32, 5 discrete actions.
    input_nodes, hidden_nodes, output_nodes = 18, 32, 5

    key = jax.random.PRNGKey(0)
    kx1, kx2, kp = jax.random.split(key, 3)
    params = init_params(kp, input_nodes, hidden_nodes, output_nodes)

    # Case 1: small batch that is not a multiple of 8 (exercises row padding).
    x1 = jax.random.normal(kx1, (10, input_nodes), jnp.float32)
    out1 = jax.block_until_ready(dqn_forward(x1, params))
    ref1 = dqn_reference(x1, params)
    assert out1.shape == (10, output_nodes), out1.shape
    assert jnp.allclose(out1, ref1, atol=2e-2, rtol=2e-2), "case1 mismatch"

    # Case 2: multi-step grid (batch_tile forces 4 grid steps of 16 rows).
    x2 = jax.random.normal(kx2, (64, input_nodes), jnp.float32)
    out2 = jax.block_until_ready(dqn_forward(x2, params, batch_tile=16))
    ref2 = dqn_reference(x2, params)
    assert out2.shape == (64, output_nodes), out2.shape
    assert jnp.allclose(out2, ref2, atol=2e-2, rtol=2e-2), "case2 mismatch"

    print("KERNEL_OK")
</pallas_src>

<mosaic_0001>
module attributes {stable_mosaic.version = 11 : i64} {
  func.func @dqn_mlp_kernel(%arg0: i32, %arg1: memref<16x18xf32, #tpu.memory_space<vmem>>, %arg2: memref<18x32xf32, #tpu.memory_space<vmem>>, %arg3: memref<1x32xf32, #tpu.memory_space<vmem>>, %arg4: memref<32x32xf32, #tpu.memory_space<vmem>>, %arg5: memref<1x32xf32, #tpu.memory_space<vmem>>, %arg6: memref<32x5xf32, #tpu.memory_space<vmem>>, %arg7: memref<1x5xf32, #tpu.memory_space<vmem>>, %arg8: memref<16x5xf32, #tpu.memory_space<vmem>>) attributes {dimension_semantics = [#tpu.dimension_semantics<parallel>], iteration_bounds = array<i64: 1>, scalar_prefetch = 0 : i64, scratch_operands = 0 : i64, tpu.core_type = #tpu.core_type<tc>, window_params = [{transform_indices = @transform_0, window_bounds = array<i64: 16, 18>}, {pipeline_mode = #tpu.pipeline_mode<synchronous>, transform_indices = @transform_1, window_bounds = array<i64: 18, 32>}, {pipeline_mode = #tpu.pipeline_mode<synchronous>, transform_indices = @transform_2, window_bounds = array<i64: 1, 32>}, {pipeline_mode = #tpu.pipeline_mode<synchronous>, transform_indices = @transform_3, window_bounds = array<i64: 32, 32>}, {pipeline_mode = #tpu.pipeline_mode<synchronous>, transform_indices = @transform_4, window_bounds = array<i64: 1, 32>}, {pipeline_mode = #tpu.pipeline_mode<synchronous>, transform_indices = @transform_5, window_bounds = array<i64: 32, 5>}, {pipeline_mode = #tpu.pipeline_mode<synchronous>, transform_indices = @transform_6, window_bounds = array<i64: 1, 5>}, {transform_indices = @transform_7, window_bounds = array<i64: 16, 5>}]} {
    %c0 = arith.constant 0 : index
    %c0_0 = arith.constant 0 : index
    %0 = vector.load %arg1[%c0, %c0_0] : memref<16x18xf32, #tpu.memory_space<vmem>>, vector<16x18xf32>
    %c0_1 = arith.constant 0 : index
    %c0_2 = arith.constant 0 : index
    %1 = vector.load %arg2[%c0_1, %c0_2] : memref<18x32xf32, #tpu.memory_space<vmem>>, vector<18x32xf32>
    %cst = arith.constant dense<0.000000e+00> : vector<16x32xf32>
    %2 = tpu.matmul %0, %1, %cst {dimension_numbers = #tpu.dot_dimension_numbers<[1], [0], [0], [1], [0, 0, 1, 1], [], []>} : vector<16x18xf32>, vector<18x32xf32>, vector<16x32xf32> -> vector<16x32xf32>
    %c0_3 = arith.constant 0 : index
    %c0_4 = arith.constant 0 : index
    %3 = vector.load %arg3[%c0_3, %c0_4] : memref<1x32xf32, #tpu.memory_space<vmem>>, vector<1x32xf32>
    %4 = vector.broadcast %3 : vector<1x32xf32> to vector<16x32xf32>
    %5 = arith.addf %2, %4 : vector<16x32xf32>
    %cst_5 = arith.constant 0.000000e+00 : f32
    %6 = vector.broadcast %cst_5 : f32 to vector<16x32xf32>
    %7 = arith.maximumf %5, %6 : vector<16x32xf32>
    %c0_6 = arith.constant 0 : index
    %c0_7 = arith.constant 0 : index
    %8 = vector.load %arg4[%c0_6, %c0_7] : memref<32x32xf32, #tpu.memory_space<vmem>>, vector<32x32xf32>
    %cst_8 = arith.constant dense<0.000000e+00> : vector<16x32xf32>
    %9 = tpu.matmul %7, %8, %cst_8 {dimension_numbers = #tpu.dot_dimension_numbers<[1], [0], [0], [1], [0, 0, 1, 1], [], []>} : vector<16x32xf32>, vector<32x32xf32>, vector<16x32xf32> -> vector<16x32xf32>
    %c0_9 = arith.constant 0 : index
    %c0_10 = arith.constant 0 : index
    %10 = vector.load %arg5[%c0_9, %c0_10] : memref<1x32xf32, #tpu.memory_space<vmem>>, vector<1x32xf32>
    %11 = vector.broadcast %10 : vector<1x32xf32> to vector<16x32xf32>
    %12 = arith.addf %9, %11 : vector<16x32xf32>
    %cst_11 = arith.constant 0.000000e+00 : f32
    %13 = vector.broadcast %cst_11 : f32 to vector<16x32xf32>
    %14 = arith.maximumf %12, %13 : vector<16x32xf32>
    %c0_12 = arith.constant 0 : index
    %c0_13 = arith.constant 0 : index
    %15 = vector.load %arg6[%c0_12, %c0_13] : memref<32x5xf32, #tpu.memory_space<vmem>>, vector<32x5xf32>
    %cst_14 = arith.constant dense<0.000000e+00> : vector<16x5xf32>
    %16 = tpu.matmul %14, %15, %cst_14 {dimension_numbers = #tpu.dot_dimension_numbers<[1], [0], [0], [1], [0, 0, 1, 1], [], []>} : vector<16x32xf32>, vector<32x5xf32>, vector<16x5xf32> -> vector<16x5xf32>
    %c0_15 = arith.constant 0 : index
    %c0_16 = arith.constant 0 : index
    %17 = vector.load %arg7[%c0_15, %c0_16] : memref<1x5xf32, #tpu.memory_space<vmem>>, vector<1x5xf32>
    %18 = vector.broadcast %17 : vector<1x5xf32> to vector<16x5xf32>
    %19 = arith.addf %16, %18 : vector<16x5xf32>
    %c0_17 = arith.constant 0 : index
    %c0_18 = arith.constant 0 : index
    %20 = vector.load %arg8[%c0_17, %c0_18] : memref<16x5xf32, #tpu.memory_space<vmem>>, vector<16x5xf32>
    tpu.vector_store %arg8[%c0_17, %c0_18], %19 {strides = array<i32>} : memref<16x5xf32, #tpu.memory_space<vmem>>, vector<16x5xf32>,
    return
  }
  func.func @transform_0(%arg0: i32) -> (i32, i32) {
    %c0_i32 = arith.constant 0 : i32
    %c0_i32_0 = arith.constant 0 : i32
    return %arg0, %c0_i32 : i32, i32
  }
  func.func @transform_1(%arg0: i32) -> (i32, i32) {
    %c0_i32 = arith.constant 0 : i32
    %c0_i32_0 = arith.constant 0 : i32
    %c0_i32_1 = arith.constant 0 : i32
    return %c0_i32, %c0_i32_0 : i32, i32
  }
  func.func @transform_2(%arg0: i32) -> (i32, i32) {
    %c0_i32 = arith.constant 0 : i32
    %c0_i32_0 = arith.constant 0 : i32
    %c0_i32_1 = arith.constant 0 : i32
    return %c0_i32, %c0_i32_0 : i32, i32
  }
  func.func @transform_3(%arg0: i32) -> (i32, i32) {
    %c0_i32 = arith.constant 0 : i32
    %c0_i32_0 = arith.constant 0 : i32
    %c0_i32_1 = arith.constant 0 : i32
    return %c0_i32, %c0_i32_0 : i32, i32
  }
  func.func @transform_4(%arg0: i32) -> (i32, i32) {
    %c0_i32 = arith.constant 0 : i32
    %c0_i32_0 = arith.constant 0 : i32
    %c0_i32_1 = arith.constant 0 : i32
    return %c0_i32, %c0_i32_0 : i32, i32
  }
  func.func @transform_5(%arg0: i32) -> (i32, i32) {
    %c0_i32 = arith.constant 0 : i32
    %c0_i32_0 = arith.constant 0 : i32
    %c0_i32_1 = arith.constant 0 : i32
    return %c0_i32, %c0_i32_0 : i32, i32
  }
  func.func @transform_6(%arg0: i32) -> (i32, i32) {
    %c0_i32 = arith.constant 0 : i32
    %c0_i32_0 = arith.constant 0 : i32
    %c0_i32_1 = arith.constant 0 : i32
    return %c0_i32, %c0_i32_0 : i32, i32
  }
  func.func @transform_7(%arg0: i32) -> (i32, i32) {
    %c0_i32 = arith.constant 0 : i32
    %c0_i32_0 = arith.constant 0 : i32
    return %arg0, %c0_i32 : i32, i32
  }
}

</mosaic_0001>

<bundles_post_ra>
// kernel: tpu_custom_call.1
= control target key start
LH: loop header
LB: loop body
LE: loop exit
PB: predicated region body
PF: predicated region fallthrough
CT: control target
= control target key end

     0   :  { %12 = vsyncpa [#allocation3], 0  ;;  %s440_s24 = smov [#allocation2]   ;;  %s546_s0 = inlined_call_operand.vmem [shape: f32[16,18], index: 0, kind: input, shape index: {}]   ;;  %s547_s1 = inlined_call_operand.hbm [shape: f32[18,32], index: 1, kind: input, shape index: {}]   ;;  %s548_s2 = inlined_call_operand.vmem [shape: f32[1,32], index: 2, kind: input, shape index: {}]   ;;  %s549_s3 = inlined_call_operand.vmem [shape: f32[32,32], index: 3, kind: input, shape index: {}]   ;;  %s550_s4 = inlined_call_operand.vmem [shape: f32[1,32], index: 4, kind: input, shape index: {}]   ;;  %s551_s5 = inlined_call_operand.vmem [shape: f32[32,5], index: 5, kind: input, shape index: {}]   ;;  %s552_s6 = inlined_call_operand.vmem [shape: f32[1,5], index: 6, kind: input, shape index: {}]   ;;  %s553_s7 = inlined_call_operand.vmem [shape: f32[16,5], index: 7, kind: output, shape index: {}]  }
   0x1   :  { %s20_s25 = sshll.u32 %s440_s24, 4  ;;  %s416_s28 = scalar_lea.hbm %s547_s1, 384  ;;  %s21_s25 = int_to_ptr.vmem [resolvable:$true] %s20_s25 }
   0x2   :  { %p417_p0 = scmp.ne.s32.totalorder %s547_s1, %s416_s28  ;;  %p420_p1 = scmp.lt.u32.totalorder %s416_s28, %s547_s1 }
   0x4   :  { %p422_p2 = pnand %p420_p1, %p417_p0 }
   0x6   :  { %425 = shalt.err (!%p422_p2)
}
   0x7   :  { %s426_s10 = scalar_lea.vmem %s21_s25, 384  ;;  %p431_p4 = scmp.lt.s32.totalorder %s21_s25, %s21_s25 }
   0x8   :  { %p427_p3 = scmp.ne.s32.totalorder %s21_s25, %s426_s10  ;;  %p432_p5 = scmp.lt.s32.totalorder %s426_s10, %s426_s10 }
   0xa   :  { %p433_p6 = por %p432_p5, %p431_p4 }
   0xc   :  { %p434_p7 = pnand %p433_p6, %p427_p3 }
   0xe   :  { %437 = shalt.err (!%p434_p7)
}
   0xf   :  { %s441_s11 = smov 128   ;;  %s442_s12 = smov 8  }
  0x10   :  { %26 = dma.hbm_to_vmem [thread:$0]  %s547_s1, 384, %s21_s25, [#allocation3], %s441_s11, %s441_s11, %s442_s12  }
  0x11   :  { %438 = dma.done.wait [#allocation3], 384  }
  0x12   :  { %439 = vsyncadd [#allocation3], 4294966912  ;;  %vm52_vm0 = vcmask 146432   ;;  %v42_v0 = vld [vmem:[#allocation2] sm:$0xff]  ;;  %v43_v1 = vld [vmem:[#allocation2 + $0x8] sm:$0xff]  ;;  %vm59_vm1 = vcmask 1041408  }
  0x13   :  { %v393_v2 = vpack.c.bf16 %v43_v1, %v42_v0  ;;  %v40_v3 = vld [vmem:[%s546_s0] sm:$0xff]  ;;  %v44_v5 = vld [vmem:[#allocation2 + $0x10] sm:$0x3]  ;;  %v141_v6 = vld [vmem:[%s549_s3 + $0x8] sm:$0xff]  ;;  %vm151_vm2 = vcmask 261120   ;;  %vm327_vm3 = vcmask 39936  }
  0x14   :  { %v140_v4 = vld [vmem:[%s549_s3] sm:$0xff]  ;;  %368 = vmatprep.mubr.msk.f32.mxu0 %vm52_vm0, %v40_v3  ;;  %v41_v8 = vld [vmem:[%s546_s0 + $0x8] sm:$0xff]  ;;  %v142_v9 = vld [vmem:[%s549_s3 + $0x10] sm:$0xff] }
  0x15   :  { %394 = vmatprep.subr.bf16.mxu0 %v393_v2  ;;  %v397_v7 = vpack.c.bf16 %v141_v6, %v140_v4  ;;  %v143_v10 = vld [vmem:[%s549_s3 + $0x18] sm:$0xff]  ;;  %v235_v12 = vld [vmem:[%s551_s5] sm:$0xff]  ;;  %v236_v13 = vld [vmem:[%s551_s5 + $0x8] sm:$0xff] }
  0x16   :  { %396 = vmatpush3.bf16.msra.mxu0 %v393_v2  ;;  %v401_v11 = vpack.c.bf16 %v143_v10, %v142_v9  ;;  %v405_v14 = vpack.c.bf16 %v236_v13, %v235_v12  ;;  %v335_v15 = vld [vmem:[%s548_s2] ss:$0 sm:$0xff]  ;;  %v237_v22 = vld [vmem:[%s551_s5 + $0x10] sm:$0xff]  ;;  %v238_v23 = vld [vmem:[%s551_s5 + $0x18] sm:$0xff] }
  0x17   :  { %366 = vmatprep.subr.msk.mxu0 %vm59_vm1, %v44_v5  ;;  %398 = vmatprep.subr.bf16.mxu1 %v397_v7  ;;  %v409_v24 = vpack.c.bf16 %v238_v23, %v237_v22  ;;  %v339_v25 = vld [vmem:[%s550_s4] ss:$0 sm:$0xff] }
  0x18   :  { %400 = vmatpush3.bf16.msra.mxu1 %v397_v7  ;;  %v342_v32 = vld [vmem:[%s552_s6] ss:$0 sm:$0xff] }
  0x19   :  { %402 = vmatprep.subr.bf16.mxu1 %v401_v11 }
  0x1a   :  { %367 = vmatpush3.msk.msra.mxu0 %vm59_vm1, %v44_v5 }
  0x1b   :  { %369 = vmatmul.mubr.msk.f32.vlgmr.msra.gmra.mrb[0].mxu0 %vm52_vm0, %v41_v8  ;;  %406 = vmatprep.subr.bf16.mxu0 %v405_v14 }
  0x1c   :  { %404 = vmatpush3.bf16.msra.mxu1 %v401_v11  ;;  %408 = vmatpush3.bf16.msra.mxu0 %v405_v14 }
  0x1d   :  { %410 = vmatprep.subr.bf16.mxu0 %v409_v24 }
  0x20   :  { %412 = vmatpush3.bf16.msra.mxu0 %v409_v24 }
  0xee   :  { %v370_v16 = vpop.f32.mrb[0].mxu0 }
  0xef   :  { %v135_v17 = vadd.f32 %v370_v16, %v335_v15  ;;  %v129_v18 = vpop.f32.mrb[1].mxu0 }
  0xf0   :  { %v130_v19 = vadd.f32 %v335_v15, %v129_v18 }
  0xf1   :  { %v139_v21 = vmax.f32 %v135_v17, 0.0 }
  0xf2   :  { %v138_v20 = vmax.f32 %v130_v19, 0.0 }
  0xf4   :  { %379 = vmatprep.mubr.msk.f32.mxu1 %vm151_vm2, %v138_v20 }
  0xf5   :  { %380 = vmatmul.mubr.msk.f32.vlgmr.msra.gmra.mrb[0].mxu1 %vm151_vm2, %v139_v21 }
 0x1c8   :  { %v381_v26 = vpop.f32.mrb[0].mxu1 }
 0x1c9   :  { %v230_v27 = vadd.f32 %v381_v26, %v339_v25  ;;  %v224_v28 = vpop.f32.mrb[1].mxu1 }
 0x1ca   :  { %v225_v29 = vadd.f32 %v339_v25, %v224_v28 }
 0x1cb   :  { %v234_v31 = vmax.f32 %v230_v27, 0.0 }
 0x1cc   :  { %v233_v30 = vmax.f32 %v225_v29, 0.0 }
 0x1ce   :  { %390 = vmatprep.mubr.msk.f32.mxu0 %vm151_vm2, %v233_v30 }
 0x1cf   :  { %391 = vmatmul.mubr.msk.f32.vlgmr.msra.gmra.mrb[2].mxu0 %vm151_vm2, %v234_v31 }
 0x2a2   :  { %v392_v33 = vpop.f32.mrb[2].mxu0 }
 0x2a3   :  { %v324_v34 = vadd.f32 %v392_v33, %v342_v32  ;;  %v318_v35 = vpop.f32.mrb[3].mxu0 }
 0x2a4   :  { %v319_v36 = vadd.f32 %v342_v32, %v318_v35 }
 0x2a5   :  { %329 = vst.msk [vmem:[%s553_s7 + $0x8] sm:$0xff] %vm327_vm3, %v324_v34 }
 0x2a6   :  { %328 = vst.msk [vmem:[%s553_s7] sm:$0xff] %vm327_vm3, %v319_v36 }
 0x2a7   :  { %334 = vsyncpa [#allocation3], 1 }

</bundles_post_ra>
